<compile_context>
chip_gen: v7x
topology: tpu7x:2x2x1
jax: 0.10.0
libtpu: 0.0.40
codegen_flags: <defaults>
</compile_context>

<pallas_src>
import jax
import jax.numpy as jnp
from jax.experimental import pallas as pl
from jax.experimental.pallas import tpu as pltpu


# ---------------------------------------------------------------------------
# Pass 1: coordinate pooling + conv1/BN/h_swish + conv_h/conv_w + sigmoid.
# Grid = (N, S_tiles); the S axis is a reduction over a VMEM accumulator.
# ---------------------------------------------------------------------------
def _ca_gates_kernel(x_ref, selp_ref, w1_ref, b1_ref, wh_ref, bh_ref,
                     ww_ref, bw_ref, ah_ref, aw_ref, pool_acc):
    s = pl.program_id(1)

    @pl.when(s == 0)
    def _():
        pool_acc[...] = jnp.zeros_like(pool_acc)

    # Partial coordinate pooling for this lane tile on the MXU:
    #   pool_acc[c, h]     += sum_{s in tile : s // W == h} x[c, s]
    #   pool_acc[c, H + w] += sum_{s in tile : s %  W == w} x[c, s]
    pool_acc[...] += jnp.dot(x_ref[...], selp_ref[...],
                             preferred_element_type=jnp.float32)

    @pl.when(s == pl.num_programs(1) - 1)
    def _():
        H = ah_ref.shape[-1]
        W = aw_ref.shape[-1]
        # Apply the 1/W (mean over w) and 1/H (mean over h) scales once on the
        # tiny pooled accumulator (exact in f32, single conv1 weight needed).
        col = jax.lax.broadcasted_iota(jnp.int32, (1, H + W), 1)
        pooled = pool_acc[...] * jnp.where(col < H, 1.0 / W, 1.0 / H)

        # conv1 (1x1) with BatchNorm (inference) + bias folded in, then h_swish.
        z = jnp.dot(w1_ref[...], pooled,
                    preferred_element_type=jnp.float32) + b1_ref[...]
        z = z * (jnp.clip(z + 3.0, 0.0, 6.0) * (1.0 / 6.0))

        # conv_h / conv_w (1x1) + sigmoid gates (tiny, once per image).
        ah_ref[...] = jax.nn.sigmoid(
            jnp.dot(wh_ref[...], z[:, :H],
                    preferred_element_type=jnp.float32) + bh_ref[...])
        aw_ref[...] = jax.nn.sigmoid(
            jnp.dot(ww_ref[...], z[:, H:],
                    preferred_element_type=jnp.float32) + bw_ref[...])


# ---------------------------------------------------------------------------
# Pass 2: broadcast the gates back to the lane-dense (C, TS) tile via one-hot
# MXU matmuls and apply them.  Grid = (N, S_tiles), fully parallel.
# ---------------------------------------------------------------------------
def _ca_apply_kernel(x_ref, ah_ref, aw_ref, selh_ref, selw_ref, o_ref):
    x = x_ref[...]
    dt = x.dtype
    gh = jnp.dot(ah_ref[...].astype(dt), selh_ref[...], preferred_element_type=dt)
    gw = jnp.dot(aw_ref[...].astype(dt), selw_ref[...], preferred_element_type=dt)
    o_ref[...] = (x * gh * gw).astype(o_ref.dtype)


def ca_layer(x, params, *, eps=1e-5, lane_tile_bytes=1 << 20):
    """x: (N, C, H, W). params: dict from init_params (PyTorch-layout weights)."""
    N, C, H, W = x.shape
    S = H * W
    mid = params["w1"].shape[0]
    dt = x.dtype
    isz = x.dtype.itemsize

    # ---- Fold BatchNorm (running stats) + conv1 bias into one weight/bias pair.
    scale = params["gamma"] * jax.lax.rsqrt(params["var"] + eps)           # (mid, 1)
    w1_eff = (params["w1"] * scale).astype(jnp.float32)                    # (mid, C)
    b1_eff = ((params["b1"] - params["mean"]) * scale
              + params["beta"]).astype(jnp.float32)                        # (mid, 1)
    wh = params["wh"].astype(jnp.float32)                                  # (C, mid)
    bh = params["bh"].astype(jnp.float32)                                  # (C, 1)
    ww = params["ww"].astype(jnp.float32)                                  # (C, mid)
    bw = params["bw"].astype(jnp.float32)                                  # (C, 1)

    # ---- Lane tiling of the flattened spatial axis (multiple of 128 lanes).
    s128 = -(-S // 128) * 128
    ts = max(128, (lane_tile_bytes // max(C * isz, 1)) // 128 * 128)
    ts = min(ts, s128)
    s_pad = -(-S // ts) * ts
    n_s = s_pad // ts

    x_flat = x.reshape(N, C, S)                      # lane-dense view; free in XLA
    if s_pad != S:
        x_flat = jnp.pad(x_flat, ((0, 0), (0, 0), (0, s_pad - S)))

    # ---- One-hot selectors between s = h*W + w and (h, w), in the input dtype.
    s_idx = jnp.arange(s_pad)
    valid = (s_idx < S)[None, :]
    selh_e = (((s_idx[None, :] // W) == jnp.arange(H)[:, None]) & valid).astype(dt)  # (H, S_pad)
    selw_e = (((s_idx[None, :] % W) == jnp.arange(W)[:, None]) & valid).astype(dt)   # (W, S_pad)
    sel_pool = jnp.concatenate([selh_e, selw_e], axis=0).T                           # (S_pad, H+W)

    # ---- VMEM budget: estimate both passes, leave headroom below capacity.
    try:
        vmem_cap = pltpu.get_tpu_info().vmem_capacity_bytes
    except Exception:
        vmem_cap = 64 << 20
    const_bytes = 4 * (mid * C + mid + 2 * C * mid + 2 * C) + 2 * C * (H + W) * 4
    est1 = 2 * C * ts * isz + 2 * ts * (H + W) * isz + C * (H + W) * 4 + const_bytes
    est2 = 4 * C * ts * isz + 2 * ts * (H + W) * isz + const_bytes
    vmem_limit = int(min(max(2 * max(est1, est2), 32 << 20), (vmem_cap * 3) // 4))

    def const(shape):
        return pl.BlockSpec(shape, lambda n, s: (0,) * len(shape))

    # ---- Pass 1: compute the gates (tiny outputs); S axis is the reduction.
    ah, aw = pl.pallas_call(
        _ca_gates_kernel,
        out_shape=(jax.ShapeDtypeStruct((N, C, H), jnp.float32),
                   jax.ShapeDtypeStruct((N, C, W), jnp.float32)),
        grid_spec=pltpu.PrefetchScalarGridSpec(
            num_scalar_prefetch=0,
            grid=(N, n_s),
            in_specs=[
                pl.BlockSpec((None, C, ts), lambda n, s: (n, 0, s)),   # x tile
                pl.BlockSpec((ts, H + W), lambda n, s: (s, 0)),        # pooling selector
                const((mid, C)),    # conv1 weight (BN folded)
                const((mid, 1)),    # conv1 bias   (BN folded)
                const((C, mid)),    # conv_h weight
                const((C, 1)),      # conv_h bias
                const((C, mid)),    # conv_w weight
                const((C, 1)),      # conv_w bias
            ],
            out_specs=[
                pl.BlockSpec((None, C, H), lambda n, s: (n, 0, 0)),
                pl.BlockSpec((None, C, W), lambda n, s: (n, 0, 0)),
            ],
            scratch_shapes=[pltpu.VMEM((C, H + W), jnp.float32)],
        ),
        compiler_params=pltpu.CompilerParams(
            dimension_semantics=("parallel", "arbitrary"),
            vmem_limit_bytes=vmem_limit),
    )(x_flat, sel_pool, w1_eff, b1_eff, wh, bh, ww, bw)

    # ---- Pass 2: apply the gates tile-by-tile (fully parallel grid).
    out = pl.pallas_call(
        _ca_apply_kernel,
        out_shape=jax.ShapeDtypeStruct((N, C, s_pad), dt),
        grid_spec=pltpu.PrefetchScalarGridSpec(
            num_scalar_prefetch=0,
            grid=(N, n_s),
            in_specs=[
                pl.BlockSpec((None, C, ts), lambda n, s: (n, 0, s)),   # x tile
                pl.BlockSpec((None, C, H), lambda n, s: (n, 0, 0)),    # a_h gates
                pl.BlockSpec((None, C, W), lambda n, s: (n, 0, 0)),    # a_w gates
                pl.BlockSpec((H, ts), lambda n, s: (0, s)),            # h -> s selector
                pl.BlockSpec((W, ts), lambda n, s: (0, s)),            # w -> s selector
            ],
            out_specs=pl.BlockSpec((None, C, ts), lambda n, s: (n, 0, s)),
        ),
        compiler_params=pltpu.CompilerParams(
            dimension_semantics=("parallel", "parallel"),
            vmem_limit_bytes=vmem_limit),
    )(x_flat, ah, aw, selh_e, selw_e)

    return out[:, :, :S].reshape(N, C, H, W)


def init_params(key, channels, reduction=4):
    mid = max(8, channels // reduction)
    ks = jax.random.split(key, 8)
    scale1 = 1.0 / jnp.sqrt(channels)
    scale2 = 1.0 / jnp.sqrt(mid)
    return {
        "w1": jax.random.normal(ks[0], (mid, channels), jnp.float32) * scale1,
        "b1": jax.random.normal(ks[1], (mid, 1), jnp.float32) * scale1,
        "gamma": jnp.ones((mid, 1), jnp.float32),
        "beta": jnp.zeros((mid, 1), jnp.float32),
        "mean": jax.random.normal(ks[2], (mid, 1), jnp.float32) * 0.1,
        "var": jnp.abs(jax.random.normal(ks[3], (mid, 1), jnp.float32)) + 0.5,
        "wh": jax.random.normal(ks[4], (channels, mid), jnp.float32) * scale2,
        "bh": jax.random.normal(ks[5], (channels, 1), jnp.float32) * scale2,
        "ww": jax.random.normal(ks[6], (channels, mid), jnp.float32) * scale2,
        "bw": jax.random.normal(ks[7], (channels, 1), jnp.float32) * scale2,
    }


def ca_layer_ref(x, params, eps=1e-5):
    """Pure-JAX reference of the same forward (mirrors the PyTorch module)."""
    N, C, H, W = x.shape
    ph = jnp.mean(x, axis=3)                       # (N, C, H)
    pw = jnp.mean(x, axis=2)                       # (N, C, W)
    y = jnp.concatenate([ph, pw], axis=2)          # (N, C, H+W)
    z = jnp.einsum("mc,ncs->nms", params["w1"], y) + params["b1"][None]
    z = (z - params["mean"][None]) * jax.lax.rsqrt(params["var"][None] + eps) \
        * params["gamma"][None] + params["beta"][None]
    z = z * (jnp.clip(z + 3.0, 0.0, 6.0) / 6.0)
    zh, zw = z[:, :, :H], z[:, :, H:]
    a_h = jax.nn.sigmoid(jnp.einsum("cm,nms->ncs", params["wh"], zh)
                         + params["bh"][None])     # (N, C, H)
    a_w = jax.nn.sigmoid(jnp.einsum("cm,nms->ncs", params["ww"], zw)
                         + params["bw"][None])     # (N, C, W)
    return x * a_h[:, :, :, None] * a_w[:, :, None, :]


if __name__ == "__main__":
    key = jax.random.PRNGKey(0)
    k_x, k_p = jax.random.split(key)

    N, C, H, W = 2, 4, 16, 16
    x = jax.random.normal(k_x, (N, C, H, W), jnp.float32)
    params = init_params(k_p, C, reduction=4)

    out = ca_layer(x, params)
    out = jax.block_until_ready(out)

    ref = ca_layer_ref(x, params)
    assert out.shape == (N, C, H, W)
    assert jnp.allclose(out, ref, atol=1e-5, rtol=1e-5), "mismatch vs reference"

    print("KERNEL_OK")
</pallas_src>

<mosaic_0001>
module attributes {stable_mosaic.version = 11 : i64} {
  func.func @_ca_gates_kernel(%arg0: i32, %arg1: i32, %arg2: memref<1x4x256xf32, #tpu.memory_space<vmem>>, %arg3: memref<256x32xf32, #tpu.memory_space<vmem>>, %arg4: memref<8x4xf32, #tpu.memory_space<vmem>>, %arg5: memref<8x1xf32, #tpu.memory_space<vmem>>, %arg6: memref<4x8xf32, #tpu.memory_space<vmem>>, %arg7: memref<4x1xf32, #tpu.memory_space<vmem>>, %arg8: memref<4x8xf32, #tpu.memory_space<vmem>>, %arg9: memref<4x1xf32, #tpu.memory_space<vmem>>, %arg10: memref<1x4x16xf32, #tpu.memory_space<vmem>>, %arg11: memref<1x4x16xf32, #tpu.memory_space<vmem>>, %arg12: memref<4x32xf32, #tpu.memory_space<vmem>>) attributes {dimension_semantics = [#tpu.dimension_semantics<parallel>, #tpu.dimension_semantics<arbitrary>], iteration_bounds = array<i64: 2, 1>, scalar_prefetch = 0 : i64, scratch_operands = 1 : i64, tpu.core_type = #tpu.core_type<tc>, window_params = [{transform_indices = @transform_0, window_bounds = array<i64: 1, 4, 256>}, {transform_indices = @transform_1, window_bounds = array<i64: 256, 32>}, {pipeline_mode = #tpu.pipeline_mode<synchronous>, transform_indices = @transform_2, window_bounds = array<i64: 8, 4>}, {pipeline_mode = #tpu.pipeline_mode<synchronous>, transform_indices = @transform_3, window_bounds = array<i64: 8, 1>}, {pipeline_mode = #tpu.pipeline_mode<synchronous>, transform_indices = @transform_4, window_bounds = array<i64: 4, 8>}, {pipeline_mode = #tpu.pipeline_mode<synchronous>, transform_indices = @transform_5, window_bounds = array<i64: 4, 1>}, {pipeline_mode = #tpu.pipeline_mode<synchronous>, transform_indices = @transform_6, window_bounds = array<i64: 4, 8>}, {pipeline_mode = #tpu.pipeline_mode<synchronous>, transform_indices = @transform_7, window_bounds = array<i64: 4, 1>}, {transform_indices = @transform_8, window_bounds = array<i64: 1, 4, 16>}, {transform_indices = @transform_9, window_bounds = array<i64: 1, 4, 16>}]} {
    %c0_i32 = arith.constant 0 : i32
    %0 = arith.cmpi eq, %arg1, %c0_i32 : i32
    %1 = arith.extui %0 : i1 to i32
    %c0_i32_0 = arith.constant 0 : i32
    %2 = arith.cmpi ne, %1, %c0_i32_0 : i32
    scf.if %2 {
      %cst_11 = arith.constant 0.000000e+00 : f32
      %13 = vector.broadcast %cst_11 : f32 to vector<4x32xf32>
      %c0_12 = arith.constant 0 : index
      %c0_13 = arith.constant 0 : index
      %14 = vector.load %arg12[%c0_12, %c0_13] : memref<4x32xf32, #tpu.memory_space<vmem>>, vector<4x32xf32>
      tpu.vector_store %arg12[%c0_12, %c0_13], %13 {strides = array<i32>} : memref<4x32xf32, #tpu.memory_space<vmem>>, vector<4x32xf32>,
    } else {
    }
    %c0 = arith.constant 0 : index
    %c0_1 = arith.constant 0 : index
    %3 = vector.load %arg12[%c0, %c0_1] : memref<4x32xf32, #tpu.memory_space<vmem>>, vector<4x32xf32>
    %c0_2 = arith.constant 0 : index
    %c0_3 = arith.constant 0 : index
    %c0_4 = arith.constant 0 : index
    %4 = vector.load %arg2[%c0_2, %c0_3, %c0_4] : memref<1x4x256xf32, #tpu.memory_space<vmem>>, vector<1x4x256xf32>
    %5 = vector.shape_cast %4 : vector<1x4x256xf32> to vector<4x256xf32>
    %c0_5 = arith.constant 0 : index
    %c0_6 = arith.constant 0 : index
    %6 = vector.load %arg3[%c0_5, %c0_6] : memref<256x32xf32, #tpu.memory_space<vmem>>, vector<256x32xf32>
    %cst = arith.constant dense<0.000000e+00> : vector<4x32xf32>
    %7 = tpu.matmul %5, %6, %cst {dimension_numbers = #tpu.dot_dimension_numbers<[1], [0], [0], [1], [0, 0, 1, 1], [], []>} : vector<4x256xf32>, vector<256x32xf32>, vector<4x32xf32> -> vector<4x32xf32>
    %8 = arith.addf %3, %7 : vector<4x32xf32>
    %c0_7 = arith.constant 0 : index
    %c0_8 = arith.constant 0 : index
    %9 = vector.load %arg12[%c0_7, %c0_8] : memref<4x32xf32, #tpu.memory_space<vmem>>, vector<4x32xf32>
    tpu.vector_store %arg12[%c0_7, %c0_8], %8 {strides = array<i32>} : memref<4x32xf32, #tpu.memory_space<vmem>>, vector<4x32xf32>,
    %c0_i32_9 = arith.constant 0 : i32
    %10 = arith.cmpi eq, %arg1, %c0_i32_9 : i32
    %11 = arith.extui %10 : i1 to i32
    %c0_i32_10 = arith.constant 0 : i32
    %12 = arith.cmpi ne, %11, %c0_i32_10 : i32
    scf.if %12 {
      %13 = tpu.iota {dimensions = array<i32: 1>} : vector<1x32xi32>
      %c0_11 = arith.constant 0 : index
      %c0_12 = arith.constant 0 : index
      %14 = vector.load %arg12[%c0_11, %c0_12] : memref<4x32xf32, #tpu.memory_space<vmem>>, vector<4x32xf32>
      %c16_i32 = arith.constant 16 : i32
      %15 = vector.broadcast %c16_i32 : i32 to vector<1x32xi32>
      %16 = arith.cmpi slt, %13, %15 : vector<1x32xi32>
      %cst_13 = arith.constant 6.250000e-02 : f32
      %cst_14 = arith.constant 6.250000e-02 : f32
      %17 = vector.broadcast %cst_13 : f32 to vector<1x32xf32>
      %18 = vector.broadcast %cst_14 : f32 to vector<1x32xf32>
      %19 = arith.select %16, %17, %18 : vector<1x32xi1>, vector<1x32xf32>
      %20 = vector.broadcast %19 : vector<1x32xf32> to vector<4x32xf32>
      %21 = arith.mulf %14, %20 : vector<4x32xf32>
      %c0_15 = arith.constant 0 : index
      %c0_16 = arith.constant 0 : index
      %22 = vector.load %arg4[%c0_15, %c0_16] : memref<8x4xf32, #tpu.memory_space<vmem>>, vector<8x4xf32>
      %cst_17 = arith.constant dense<0.000000e+00> : vector<8x32xf32>
      %23 = tpu.matmul %22, %21, %cst_17 {dimension_numbers = #tpu.dot_dimension_numbers<[1], [0], [0], [1], [0, 0, 1, 1], [], []>} : vector<8x4xf32>, vector<4x32xf32>, vector<8x32xf32> -> vector<8x32xf32>
      %c0_18 = arith.constant 0 : index
      %c0_19 = arith.constant 0 : index
      %24 = vector.load %arg5[%c0_18, %c0_19] : memref<8x1xf32, #tpu.memory_space<vmem>>, vector<8x1xf32>
      %25 = vector.broadcast %24 : vector<8x1xf32> to vector<8x32xf32>
      %26 = arith.addf %23, %25 : vector<8x32xf32>
      %cst_20 = arith.constant 3.000000e+00 : f32
      %27 = vector.broadcast %cst_20 : f32 to vector<8x32xf32>
      %28 = arith.addf %26, %27 : vector<8x32xf32>
      %cst_21 = arith.constant 0.000000e+00 : f32
      %cst_22 = arith.constant 6.000000e+00 : f32
      %29 = vector.broadcast %cst_21 : f32 to vector<8x32xf32>
      %30 = arith.maximumf %29, %28 : vector<8x32xf32>
      %31 = vector.broadcast %cst_22 : f32 to vector<8x32xf32>
      %32 = arith.minimumf %31, %30 : vector<8x32xf32>
      %cst_23 = arith.constant 0.166666672 : f32
      %33 = vector.broadcast %cst_23 : f32 to vector<8x32xf32>
      %34 = arith.mulf %32, %33 : vector<8x32xf32>
      %35 = arith.mulf %26, %34 : vector<8x32xf32>
      %c0_24 = arith.constant 0 : index
      %c0_25 = arith.constant 0 : index
      %36 = vector.load %arg6[%c0_24, %c0_25] : memref<4x8xf32, #tpu.memory_space<vmem>>, vector<4x8xf32>
      %37 = vector.extract_strided_slice %35 {offsets = [0, 0], sizes = [8, 16], strides = [1, 1]} : vector<8x32xf32> to vector<8x16xf32>
      %cst_26 = arith.constant dense<0.000000e+00> : vector<4x16xf32>
      %38 = tpu.matmul %36, %37, %cst_26 {dimension_numbers = #tpu.dot_dimension_numbers<[1], [0], [0], [1], [0, 0, 1, 1], [], []>} : vector<4x8xf32>, vector<8x16xf32>, vector<4x16xf32> -> vector<4x16xf32>
      %c0_27 = arith.constant 0 : index
      %c0_28 = arith.constant 0 : index
      %39 = vector.load %arg7[%c0_27, %c0_28] : memref<4x1xf32, #tpu.memory_space<vmem>>, vector<4x1xf32>
      %40 = vector.broadcast %39 : vector<4x1xf32> to vector<4x16xf32>
      %41 = arith.addf %38, %40 : vector<4x16xf32>
      %42 = arith.negf %41 : vector<4x16xf32>
      %43 = math.exp %42 : vector<4x16xf32>
      %cst_29 = arith.constant 1.000000e+00 : f32
      %44 = vector.broadcast %cst_29 : f32 to vector<4x16xf32>
      %45 = arith.addf %44, %43 : vector<4x16xf32>
      %46 = arith.divf %44, %45 : vector<4x16xf32>
      %c0_30 = arith.constant 0 : index
      %c0_31 = arith.constant 0 : index
      %c0_32 = arith.constant 0 : index
      %47 = vector.load %arg10[%c0_30, %c0_31, %c0_32] : memref<1x4x16xf32, #tpu.memory_space<vmem>>, vector<1x4x16xf32>
      %48 = vector.shape_cast %47 : vector<1x4x16xf32> to vector<4x16xf32>
      %49 = vector.shape_cast %46 : vector<4x16xf32> to vector<1x4x16xf32>
      tpu.vector_store %arg10[%c0_30, %c0_31, %c0_32], %49 {strides = array<i32>} : memref<1x4x16xf32, #tpu.memory_space<vmem>>, vector<1x4x16xf32>,
      %c0_33 = arith.constant 0 : index
      %c0_34 = arith.constant 0 : index
      %50 = vector.load %arg8[%c0_33, %c0_34] : memref<4x8xf32, #tpu.memory_space<vmem>>, vector<4x8xf32>
      %51 = vector.extract_strided_slice %35 {offsets = [0, 16], sizes = [8, 16], strides = [1, 1]} : vector<8x32xf32> to vector<8x16xf32>
      %cst_35 = arith.constant dense<0.000000e+00> : vector<4x16xf32>
      %52 = tpu.matmul %50, %51, %cst_35 {dimension_numbers = #tpu.dot_dimension_numbers<[1], [0], [0], [1], [0, 0, 1, 1], [], []>} : vector<4x8xf32>, vector<8x16xf32>, vector<4x16xf32> -> vector<4x16xf32>
      %c0_36 = arith.constant 0 : index
      %c0_37 = arith.constant 0 : index
      %53 = vector.load %arg9[%c0_36, %c0_37] : memref<4x1xf32, #tpu.memory_space<vmem>>, vector<4x1xf32>
      %54 = vector.broadcast %53 : vector<4x1xf32> to vector<4x16xf32>
      %55 = arith.addf %52, %54 : vector<4x16xf32>
      %56 = arith.negf %55 : vector<4x16xf32>
      %57 = math.exp %56 : vector<4x16xf32>
      %cst_38 = arith.constant 1.000000e+00 : f32
      %58 = vector.broadcast %cst_38 : f32 to vector<4x16xf32>
      %59 = arith.addf %58, %57 : vector<4x16xf32>
      %60 = arith.divf %58, %59 : vector<4x16xf32>
      %c0_39 = arith.constant 0 : index
      %c0_40 = arith.constant 0 : index
      %c0_41 = arith.constant 0 : index
      %61 = vector.load %arg11[%c0_39, %c0_40, %c0_41] : memref<1x4x16xf32, #tpu.memory_space<vmem>>, vector<1x4x16xf32>
      %62 = vector.shape_cast %61 : vector<1x4x16xf32> to vector<4x16xf32>
      %63 = vector.shape_cast %60 : vector<4x16xf32> to vector<1x4x16xf32>
      tpu.vector_store %arg11[%c0_39, %c0_40, %c0_41], %63 {strides = array<i32>} : memref<1x4x16xf32, #tpu.memory_space<vmem>>, vector<1x4x16xf32>,
    } else {
    }
    return
  }
  func.func @transform_0(%arg0: i32, %arg1: i32) -> (i32, i32, i32) {
    %c0_i32 = arith.constant 0 : i32
    %c0_i32_0 = arith.constant 0 : i32
    return %arg0, %c0_i32, %arg1 : i32, i32, i32
  }
  func.func @transform_1(%arg0: i32, %arg1: i32) -> (i32, i32) {
    %c0_i32 = arith.constant 0 : i32
    %c0_i32_0 = arith.constant 0 : i32
    return %arg1, %c0_i32 : i32, i32
  }
  func.func @transform_2(%arg0: i32, %arg1: i32) -> (i32, i32) {
    %c0_i32 = arith.constant 0 : i32
    %c0_i32_0 = arith.constant 0 : i32
    %c0_i32_1 = arith.constant 0 : i32
    return %c0_i32, %c0_i32_0 : i32, i32
  }
  func.func @transform_3(%arg0: i32, %arg1: i32) -> (i32, i32) {
    %c0_i32 = arith.constant 0 : i32
    %c0_i32_0 = arith.constant 0 : i32
    %c0_i32_1 = arith.constant 0 : i32
    return %c0_i32, %c0_i32_0 : i32, i32
  }
  func.func @transform_4(%arg0: i32, %arg1: i32) -> (i32, i32) {
    %c0_i32 = arith.constant 0 : i32
    %c0_i32_0 = arith.constant 0 : i32
    %c0_i32_1 = arith.constant 0 : i32
    return %c0_i32, %c0_i32_0 : i32, i32
  }
  func.func @transform_5(%arg0: i32, %arg1: i32) -> (i32, i32) {
    %c0_i32 = arith.constant 0 : i32
    %c0_i32_0 = arith.constant 0 : i32
    %c0_i32_1 = arith.constant 0 : i32
    return %c0_i32, %c0_i32_0 : i32, i32
  }
  func.func @transform_6(%arg0: i32, %arg1: i32) -> (i32, i32) {
    %c0_i32 = arith.constant 0 : i32
    %c0_i32_0 = arith.constant 0 : i32
    %c0_i32_1 = arith.constant 0 : i32
    return %c0_i32, %c0_i32_0 : i32, i32
  }
  func.func @transform_7(%arg0: i32, %arg1: i32) -> (i32, i32) {
    %c0_i32 = arith.constant 0 : i32
    %c0_i32_0 = arith.constant 0 : i32
    %c0_i32_1 = arith.constant 0 : i32
    return %c0_i32, %c0_i32_0 : i32, i32
  }
  func.func @transform_8(%arg0: i32, %arg1: i32) -> (i32, i32, i32) {
    %c0_i32 = arith.constant 0 : i32
    %c0_i32_0 = arith.constant 0 : i32
    %c0_i32_1 = arith.constant 0 : i32
    return %arg0, %c0_i32, %c0_i32_0 : i32, i32, i32
  }
  func.func @transform_9(%arg0: i32, %arg1: i32) -> (i32, i32, i32) {
    %c0_i32 = arith.constant 0 : i32
    %c0_i32_0 = arith.constant 0 : i32
    %c0_i32_1 = arith.constant 0 : i32
    return %arg0, %c0_i32, %c0_i32_0 : i32, i32, i32
  }
}

</mosaic_0001>

<bundles_post_ra>
// kernel: tpu_custom_call.1
= control target key start
LH: loop header
LB: loop body
LE: loop exit
PB: predicated region body
PF: predicated region fallthrough
CT: control target
= control target key end

     0   :  { %15 = vsyncpa [#allocation4], 0  ;;  %s1563_s0 = inlined_call_operand.vmem [shape: f32[2,4,256], index: 0, kind: input, shape index: {}]   ;;  %s1564_s1 = inlined_call_operand.vmem [shape: f32[256,32], index: 1, kind: input, shape index: {}]   ;;  %s1565_s2 = inlined_call_operand.vmem [shape: f32[8,4], index: 2, kind: input, shape index: {}]   ;;  %s1566_s3 = inlined_call_operand.vmem [shape: f32[8,1], index: 3, kind: input, shape index: {}]   ;;  %s1567_s4 = inlined_call_operand.vmem [shape: f32[4,8], index: 4, kind: input, shape index: {}]   ;;  %s1568_s5 = inlined_call_operand.vmem [shape: f32[4,1], index: 5, kind: input, shape index: {}]   ;;  %s1569_s6 = inlined_call_operand.vmem [shape: f32[4,8], index: 6, kind: input, shape index: {}]   ;;  %s1570_s7 = inlined_call_operand.vmem [shape: f32[4,1], index: 7, kind: input, shape index: {}]   ;;  %s1571_s8 = inlined_call_operand.hbm [shape: f32[2,4,16], index: 8, kind: output, shape index: {0}]   ;;  %s1572_s9 = inlined_call_operand.hbm [shape: f32[2,4,16], index: 9, kind: output, shape index: {1}]  }
   0x1   :  { %17 = vsyncpa [#allocation4 + $0x1], 0 }
   0x2   :  { %18 = vsyncpa [#allocation6], 0 }
   0x3   :  { %20 = vsyncpa [#allocation6 + $0x1], 0  ;;  %s1289_s30 = smov 0   ;;  %s1291_s10 = smov 0  }
   0x4   :  { %s1293_s11 = smov 0   ;;  %s1295_s12 = smov 0  }
   0x5   :  { %s1297_s13 = smov 0   ;;  %s1299_s14 = smov 0  }
   0x6 LB: > { %s935_s15 = sadd.s32 4294967295, %s1231_s14   ;;  %s936_s16 = sadd.s32 4294967294, %s1231_s14   ;;  %s1231_s14 = sphi %s1299_s14, %s26_s14   ;;  %s1227_s13 = sphi %s1297_s13, %s1586_s13   ;;  %s1223_s12 = sphi %s1295_s12, %s1585_s12   ;;  %s1219_s11 = sphi %s1293_s11, %s1584_s11   ;;  %s1215_s10 = sphi %s1291_s10, %s1583_s10   ;;  %s1211_s30 = sphi %s1289_s30, %s1582_s30  }
   0x7   : > { %s38_s17 = sadd.s32 1, %s1227_s13  ;;  %s225_s18 = sadd.s32 1, %s1219_s11 }
   0x8   : > { %p40_p0 = scmp.ge.s32.totalorder %s38_s17, 2  ;;  %p235_p1 = scmp.ne.s32.totalorder %s1219_s11, %s1215_s10 }
   0x9   : > { %p236_p2 = scmp.eq.s32.totalorder %s935_s15, 1  ;;  %p241_p3 = scmp.ne.s32.totalorder %s1215_s10, %s1211_s30 }
   0xa   : > { %s1588_s17 = smov (%p40_p0, %s38_s17), 0  ;;  %p242_p5 = scmp.eq.s32.totalorder %s936_s16, 1 }
   0xb   : > { %1576 = sst [smem:[#allocation9_spill]] %s1588_s17  ;;  %p1329_p4 = por %p236_p2, %p235_p1 }
   0xc   : > { %s222_s20 = ssub.s32 %s1227_s13, %s1588_s17  ;;  %p940_p6 = scmp.ge.s32.totalorder %s1231_s14, 1 }
   0xd   : > { %p223_p7 = scmp.eq.s32.totalorder %s222_s20, 0  ;;  %p1336_p8 = por %p242_p5, %p241_p3 }
   0xe   : > { %p326_p9 = scmp.lt.s32.totalorder %s1231_s14, 3 }
   0xf   : > { %s1342_s22 = scalar_select %p223_p7, %s1219_s11, %s225_s18  }
  0x10   : > { %p327_p10 = pnand %p940_p6, %p326_p9 }
  0x11   : > { %v416_v0 = vld [vmem:[%s1564_s1 + $0x80] sm:$0xff] (!%p327_p10)  ;;  %v417_v1 = vld [vmem:[%s1564_s1 + $0x88] sm:$0xff] (!%p327_p10)  ;;  %p377_p11 = scmp.lt.s32.totalorder (!%p327_p10), %s1223_s12, 1  ;;  %v418_v5 = vld [vmem:[%s1564_s1 + $0x90] sm:$0xff] (!%p327_p10)  ;;  %vm396_vm0 = vcmask (!%p327_p10), 257024   ;;  %v1233_v50 = vmov (!%p327_p10), 0.0  }
  0x12   : > { %330 = sbr.rel (%p327_p10) target bundleno = 874 (0x36a), region = 52  ;;  %v400_v2 = vld [vmem:[%s1564_s1] sm:$0xff] (!%p327_p10)  ;;  %v1014_v3 = vpack.c.bf16 (!%p327_p10), %v417_v1, %v416_v0  ;;  %v401_v4 = vld [vmem:[%s1564_s1 + $0x8] sm:$0xff] (!%p327_p10)  ;;  %v419_v6 = vld [vmem:[%s1564_s1 + $0x98] sm:$0xff] (!%p327_p10)  ;;  %397 = vst.msk [vmem:[#allocation2] sm:$0xf] (!%p327_p10), %vm396_vm0, %v1233_v50  ;;  %999 = vmatprep.subr.mxu1 (!%p327_p10), %v1233_v50 }
  0x13   : > { %v1016_v7 = vpack.c.bf16 (!%p327_p10), %v401_v4, %v400_v2  ;;  %v1018_v8 = vpack.c.bf16 (!%p327_p10), %v419_v6, %v418_v5  ;;  %v402_v9 = vld [vmem:[%s1564_s1 + $0x10] sm:$0xff] (!%p327_p10)  ;;  %v403_v10 = vld [vmem:[%s1564_s1 + $0x18] sm:$0xff] (!%p327_p10)  ;;  %v420_v11 = vld [vmem:[%s1564_s1 + $0xa0] sm:$0xff] (!%p327_p10)  ;;  %vm1234_vm1 = vmmov (!%p327_p10), 0   ;;  %v1235_v52 = vmov (!%p327_p10), 0   ;;  %s1469_s25 = sand.u32 (!%p327_p10), 1, %s1215_s10  }
  0x14   : > { %1015 = vmatprep.subr.bf16.mxu0 (!%p327_p10), %v1014_v3  ;;  %v421_v12 = vld [vmem:[%s1564_s1 + $0xa8] sm:$0xff] (!%p327_p10)  ;;  %v1020_v13 = vpack.c.bf16 (!%p327_p10), %v403_v10, %v402_v9  ;;  %v404_v15 = vld [vmem:[%s1564_s1 + $0x20] sm:$0xff] (!%p327_p10)  ;;  %v422_v17 = vld [vmem:[%s1564_s1 + $0xb0] sm:$0xff] (!%p327_p10)  ;;  %1001 = vmatprep.mubr.msk.f32.mxu1 (!%p327_p10), %vm1234_vm1, %v1233_v50  ;;  %vm524_vm2 = vcmask (!%p327_p10), 1043456   ;;  %vm520_vm3 = vcmask (!%p327_p10), 31744   ;;  %vm610_vm4 = vcmask (!%p327_p10), 64512  }
  0x15   : > { %1017 = vmatpush3.bf16.msra.mxu0 (!%p327_p10), %v1016_v7  ;;  %v1022_v14 = vpack.c.bf16 (!%p327_p10), %v421_v12, %v420_v11  ;;  %v405_v16 = vld [vmem:[%s1564_s1 + $0x28] sm:$0xff] (!%p327_p10)  ;;  %v423_v18 = vld [vmem:[%s1564_s1 + $0xb8] sm:$0xff] (!%p327_p10)  ;;  %v406_v21 = vld [vmem:[%s1564_s1 + $0x30] sm:$0xff] (!%p327_p10)  ;;  %1110 = vset.pattern.permute.xlu0 (!%p327_p10), %v1235_v52  ;;  %s1575_s26 = sshll.u32 (!%p327_p10), %s1469_s25, 2  ;;  %vm690_vm5 = vcmask (!%p327_p10), 125952   ;;  %s784_s18 = scalar_lea.sflag (!%p327_p10), [#allocation4], %s1469_s25 }
  0x16   : > { %1019 = vmatprep.subr.bf16.mxu0 (!%p327_p10), %v1018_v8  ;;  %v1024_v19 = vpack.c.bf16 (!%p327_p10), %v405_v16, %v404_v15  ;;  %v1026_v20 = vpack.c.bf16 (!%p327_p10), %v423_v18, %v422_v17  ;;  %v407_v22 = vld [vmem:[%s1564_s1 + $0x38] sm:$0xff] (!%p327_p10)  ;;  %v424_v23 = vld [vmem:[%s1564_s1 + $0xc0] sm:$0xff] (!%p327_p10)  ;;  %v425_v24 = vld [vmem:[%s1564_s1 + $0xc8] sm:$0xff] (!%p327_p10)  ;;  %1111 = vset.pattern.permute.xlu1 (!%p327_p10), %v1235_v52  ;;  %s368_s27 = scalar_lea.vmem (!%p327_p10), [#allocation3], %s1575_s26  ;;  %s1237_s23 = smov (!%p327_p10), [#allocation3]  }
  0x17   : > { %v1028_v27 = vpack.c.bf16 (!%p327_p10), %v407_v22, %v406_v21  ;;  %v1030_v28 = vpack.c.bf16 (!%p327_p10), %v425_v24, %v424_v23  ;;  %v408_v29 = vld [vmem:[%s1564_s1 + $0x40] sm:$0xff] (!%p327_p10)  ;;  %v409_v30 = vld [vmem:[%s1564_s1 + $0x48] sm:$0xff] (!%p327_p10)  ;;  %v426_v31 = vld [vmem:[%s1564_s1 + $0xd0] sm:$0xff] (!%p327_p10)  ;;  %s802_s28 = sshll.u32 (!%p327_p10), %s368_s27, 4  ;;  %s1125_s24 = sshll.u32 (!%p327_p10), %s1237_s23, 4  ;;  %s1482_s28 = int_to_ptr.vmem [resolvable:$true] %s802_s28  ;;  %s1126_s24 = int_to_ptr.vmem [resolvable:$false] %s1125_s24 }
  0x18   : > { %v427_v32 = vld [vmem:[%s1564_s1 + $0xd8] sm:$0xff] (!%p327_p10)  ;;  %v1032_v33 = vpack.c.bf16 (!%p327_p10), %v409_v30, %v408_v29  ;;  %v410_v35 = vld [vmem:[%s1564_s1 + $0x50] sm:$0xff] (!%p327_p10)  ;;  %v428_v37 = vld [vmem:[%s1564_s1 + $0xe0] sm:$0xff] (!%p327_p10)  ;;  %s1127_s29 = scalar_lea.vmem (!%p327_p10), %s1126_s24, 128  ;;  %p1128_p1 = scmp.lt.s32.totalorder (!%p327_p10), %s1482_s28, %s1126_s24 }
  0x19   : > { %s378_s15 = scalar_select %p377_p11, %s1223_s12, 1  ;;  %1021 = vmatpush3.bf16.msra.mxu0 %v1020_v13  ;;  %v1034_v34 = vpack.c.bf16 %v427_v32, %v426_v31  ;;  %v411_v36 = vld [vmem:[%s1564_s1 + $0x58] sm:$0xff]  ;;  %v429_v38 = vld [vmem:[%s1564_s1 + $0xe8] sm:$0xff]  ;;  %v412_v41 = vld [vmem:[%s1564_s1 + $0x60] sm:$0xff] }
  0x1a   : > { %1023 = vmatprep.subr.bf16.mxu0 %v1022_v14  ;;  %v1036_v39 = vpack.c.bf16 %v411_v36, %v410_v35  ;;  %v1038_v40 = vpack.c.bf16 %v429_v38, %v428_v37  ;;  %v413_v42 = vld [vmem:[%s1564_s1 + $0x68] sm:$0xff]  ;;  %v430_v43 = vld [vmem:[%s1564_s1 + $0xf0] sm:$0xff]  ;;  %v431_v44 = vld [vmem:[%s1564_s1 + $0xf8] sm:$0xff] }
  0x1b   : > { %s957_s20 = sshll.u32 %s378_s15, 3  ;;  %v1040_v45 = vpack.c.bf16 %v413_v42, %v412_v41  ;;  %v1042_v46 = vpack.c.bf16 %v431_v44, %v430_v43  ;;  %v414_v47 = vld [vmem:[%s1564_s1 + $0x70] sm:$0xff]  ;;  %v415_v48 = vld [vmem:[%s1564_s1 + $0x78] sm:$0xff]  ;;  %v514_v51 = vld [vmem:[%s1566_s3] sm:$0xff]  ;;  %s1236_s15 = smov 112  }
  0x1c   : > { %s384_s17 = scalar_lea.vmem %s1563_s0, %s957_s20  ;;  %v1044_v49 = vpack.c.bf16 %v415_v48, %v414_v47  ;;  %517 = vperm.xlu0 %1110, %v514_v51   ;;  %v398_v54 = vld [vmem:[#allocation2] sm:$0xf] }
  0x1d   : > { %v399_v25 = vld [vmem:[%s384_s17] sm:$0xff]  ;;  %1025 = vmatpush3.bf16.msra.mxu0 %v1024_v19  ;;  %s1574_s17 = sshll.u32 %s1223_s12, 6 }
  0x1e   : > { %v433_v26 = vcombine.high %v399_v25, %v399_v25  ;;  %1027 = vmatprep.subr.bf16.mxu0 %v1026_v20  ;;  %v513_v60 = vld [vmem:[%s1565_s2] sm:$0xff]  ;;  %s1480_s20 = scalar_lea.hbm %s1571_s8, %s1574_s17 }
  0x1f   : > { %v604_v1 = vld [vmem:[%s1568_s5] sm:$0xf] }
  0x20   : > { %499 = vmatprep.mubr.f32.mxu0 %v433_v26  ;;  %607 = vperm.xlu1 %1111, %v604_v1   ;;  %v693_v3 = vld [vmem:[%s1570_s7] sm:$0xf] }
  0x21   : > { %1029 = vmatpush3.bf16.msra.mxu0 %v1028_v27  ;;  %v603_v8 = vld [vmem:[%s1567_s4] sm:$0xf] }
  0x22   : > { %1031 = vmatprep.subr.bf16.mxu0 %v1030_v28  ;;  %v692_v9 = vld [vmem:[%s1569_s6] sm:$0xf] }
  0x24   : > { %696 = vperm.xlu1 %1111, %v693_v3  }
  0x25   : > { %1033 = vmatpush3.bf16.msra.mxu0 %v1032_v33 }
  0x26   : > { %1035 = vmatprep.subr.bf16.mxu0 %v1034_v34 }
  0x29   : > { %1037 = vmatpush3.bf16.msra.mxu0 %v1036_v39 }
  0x2a   : > { %1039 = vmatprep.subr.bf16.mxu0 %v1038_v40 }
  0x2d   : > { %1041 = vmatpush3.bf16.msra.mxu0 %v1040_v45 }
  0x2e   : > { %1043 = vmatprep.subr.bf16.mxu0 %v1042_v46 }
  0x31   : > { %1045 = vmatpush3.bf16.msra.mxu0 %v1044_v49 }
  0x34   : > { %500 = vmatmul.mubr.f32.vlgmr.msra.gmra.mrb[0].mxu0 %v399_v25 }
  0x9b   : > { %v518_v61 = vpop.permute.xlu0 %517 }
  0x9f   : > { %v608_v11 = vpop.permute.xlu1 %607 }
 0x107   : > { %v990_v53 = vpop.f32.mrb[0].mxu0 }
 0x108   : > { %v991_v55 = vpop.f32.mrb[1].mxu0 }
 0x109   : > { %v992_v56 = vadd.f32 %v991_v55, %v990_v53 }
 0x10b   : > { %v505_v57 = vadd.f32 %v992_v56, %v398_v54 }
 0x10d   : > { %507 = vst.msk [vmem:[#allocation2] sm:$0xf] %vm396_vm0, %v505_v57 }
 0x114   : > { %v511_v58 = vld [vmem:[#allocation2] sm:$0xf] }
 0x115   : > { %v512_v59 = vmul.f32 0.0625, %v511_v58 }
 0x117   : > { %1000 = vmatpush3.msk.msra.mxu1 %vm524_vm2, %v512_v59 }
 0x118   : > { %1002 = vmatmul.mubr.msk.f32.vlgmr.msra.gmra.mrb[0].mxu1 %vm520_vm3, %v513_v60  ;;  %1004 = vmatprep.subr.mxu1 %v1233_v50 }
 0x119   : > { %1006 = vmatprep.mubr.msk.f32.mxu1 %vm1234_vm1, %v1233_v50 }
 0x1eb   : > { %v594_v62 = vpop.f32.mrb[0].mxu1 }
 0x1ec   : > { %v595_v63 = vadd.f32 %v594_v62, %v518_v61  ;;  %v1003_v0 = vpop.f32.mrb[1].mxu1 }
 0x1ee   : > { %v598_v2 = vadd.f32 3.0, %v595_v63 }
 0x1f0   : > { %v599_v4 = vmax.f32 %v598_v2, 0.0 }
 0x1f2   : > { %v600_v5 = vmin.f32 %v599_v4, 6.0 }
 0x1f4   : > { %v601_v6 = vmul.f32 0.16666667, %v600_v5 }
 0x1f6   : > { %v602_v7 = vmul.f32 %v601_v6, %v595_v63 }
 0x1f8   : > { %700 = vrot.lane.b32.xlu0 %v602_v7, %s1236_s15  ;;  %1005 = vmatpush3.msra.mxu1 %v602_v7  ;;  %s1121_s15 = scalar_lea.vmem %s1482_s28, 64 }
 0x1f9   : > { %1007 = vmatmul.mubr.msk.f32.vlgmr.msra.gmra.mrb[2].mxu1 %vm610_vm4, %v603_v8  ;;  %1009 = vmatprep.subr.mxu1 %v1233_v50  ;;  %p1122_p12 = scmp.ne.s32.totalorder %s1482_s28, %s1121_s15  ;;  %p1129_p2 = scmp.lt.s32.totalorder %s1127_s29, %s1121_s15 }
 0x1fa   : > { %1011 = vmatprep.mubr.msk.f32.mxu1 %vm1234_vm1, %v1233_v50 }
 0x1fb   : > { %p1123_p13 = pnand %p1122_p12, %p1329_p4  ;;  %p1130_p3 = por %p1129_p2, %p1128_p1 }
 0x1fd   : > { %p1124_p0 = pneg %p1123_p13 }
 0x1ff   : > { %p1131_p5 = pnand %p1130_p3, %p1124_p0 }
 0x26a   : > { %v701_v10 = vpop.permute.xlu0 %700 }
 0x26b   : > { %1010 = vmatpush3.msra.mxu1 %v701_v10 }
 0x26c   : > { %1012 = vmatmul.mubr.msk.f32.vlgmr.msra.gmra.mrb[4].mxu1 %vm610_vm4, %v692_v9 }
 0x2cc   : > { %v680_v12 = vpop.f32.mrb[2].mxu1 }
 0x2cd   : > { %v681_v13 = vadd.f32 %v680_v12, %v608_v11  ;;  %v1008_v14 = vpop.f32.mrb[3].mxu1 }
 0x2cf   : > { %v948_v15 = vmul.f32 -1.442695, %v681_v13 }
 0x2d1   : > { %1113 = vpow2.f32 %v948_v15 }
 0x2db   : > { %v1114_v16 = vpop.eup %1113 }
 0x2dc   : > { %v687_v17 = vadd.f32 1.0, %v1114_v16 }
 0x2de   : > { %1115 = vrcp.f32 %v687_v17 }
 0x2e8   : > { %v1116_v18 = vpop.eup %1115 }
 0x2e9   : > { %691 = vst.msk [vmem:[%s368_s27] sm:$0xf] %vm690_vm5, %v1116_v18 }
 0x2ea   : > { %1134 = shalt.err (!%p1131_p5)
}
 0x2eb   : > { %s1135_s27 = scalar_lea.hbm %s1480_s20, 64  ;;  %s1139_s23 = scalar_lea.hbm %s1571_s8, 128 }
 0x2ec   : > { %p1136_p6 = scmp.ne.s32.totalorder %s1480_s20, %s1135_s27  ;;  %p1140_p10 = scmp.lt.u32.totalorder %s1480_s20, %s1571_s8 }
 0x2ed   : > { %p1141_p11 = scmp.lt.u32.totalorder %s1139_s23, %s1135_s27  ;;  %p1143_p13 = scmp.lt.u32.totalorder %s1135_s27, %s1480_s20 }
 0x2ee   : > { %p1137_p7 = pnand %p1136_p6, %p1329_p4 }
 0x2ef   : > { %p1142_p12 = por %p1141_p11, %p1140_p10 }
 0x2f0   : > { %p1138_p9 = pneg %p1137_p7 }
 0x2f1   : > { %p1144_p0 = por %p1143_p13, %p1142_p12 }
 0x2f3   : > { %p1145_p1 = pnand %p1144_p0, %p1138_p9 }
 0x2f5   : > { %1148 = shalt.err (!%p1145_p1)
}
 0x2f6   : > { %1046 = dma.vmem_to_hbm [thread:$0]  (%p1329_p4), %s1482_s28, 64, %s1480_s20, %s784_s18   ;;  %v697_v19 = vpop.permute.xlu1 %696 }
 0x2f7   : > { %s1579_s26 = sshll.u32 %s1469_s25, 2  ;;  %s1580_s29 = sshll.u32 %s1223_s12, 6 }
 0x2f8   : > { %s375_s17 = scalar_lea.vmem [#allocation5], %s1579_s26  ;;  %s1514_s23 = scalar_lea.hbm %s1572_s9, %s1580_s29 }
 0x2f9   : > { %s815_s15 = sshll.u32 %s375_s17, 4  ;;  %s789_s28 = scalar_lea.sflag [#allocation6], %s1469_s25  ;;  %s1516_s15 = int_to_ptr.vmem [resolvable:$true] %s815_s15 }
 0x2fa   : > { %s1149_s20 = scalar_lea.vmem %s1516_s15, 64  ;;  %s1238_s12 = smov [#allocation5]  }
 0x2fb   : > { %p1150_p2 = scmp.ne.s32.totalorder %s1516_s15, %s1149_s20  ;;  %s1153_s18 = sshll.u32 %s1238_s12, 4  ;;  %s1154_s18 = int_to_ptr.vmem [resolvable:$false] %s1153_s18 }
 0x2fc   : > { %s1155_s24 = scalar_lea.vmem %s1154_s18, 128  ;;  %p1156_p6 = scmp.lt.s32.totalorder %s1516_s15, %s1154_s18 }
 0x2fd   : > { %p1151_p3 = pnand %p1150_p2, %p1329_p4  ;;  %p1157_p7 = scmp.lt.s32.totalorder %s1155_s24, %s1149_s20 }
 0x2ff   : > { %p1152_p5 = pneg %p1151_p3  ;;  %p1158_p9 = por %p1157_p7, %p1156_p6 }
 0x301   : > { %p1159_p10 = pnand %p1158_p9, %p1152_p5 }
 0x33f   : > { %v772_v20 = vpop.f32.mrb[4].mxu1 }
 0x340   : > { %v773_v21 = vadd.f32 %v772_v20, %v697_v19  ;;  %v1013_v22 = vpop.f32.mrb[5].mxu1 }
 0x342   : > { %v950_v23 = vmul.f32 -1.442695, %v773_v21 }
 0x344   : > { %1117 = vpow2.f32 %v950_v23 }
 0x34e   : > { %v1118_v24 = vpop.eup %1117 }
 0x34f   : > { %v779_v25 = vadd.f32 1.0, %v1118_v24 }
 0x351   : > { %1119 = vrcp.f32 %v779_v25 }
 0x35b   : > { %v1120_v26 = vpop.eup %1119 }
 0x35c   : > { %782 = vst.msk [vmem:[%s375_s17] sm:$0xf] %vm690_vm5, %v1120_v26 }
 0x35d   : > { %1162 = shalt.err (!%p1159_p10)
}
 0x35e   : > { %s1163_s25 = scalar_lea.hbm %s1514_s23, 64  ;;  %s1167_s29 = scalar_lea.hbm %s1572_s9, 128 }
 0x35f   : > { %p1164_p11 = scmp.ne.s32.totalorder %s1514_s23, %s1163_s25  ;;  %p1168_p0 = scmp.lt.u32.totalorder %s1514_s23, %s1572_s9 }
 0x360   : > { %p1169_p1 = scmp.lt.u32.totalorder %s1167_s29, %s1163_s25  ;;  %p1171_p3 = scmp.lt.u32.totalorder %s1163_s25, %s1514_s23 }
 0x361   : > { %p1165_p12 = pnand %p1164_p11, %p1329_p4 }
 0x362   : > { %p1170_p2 = por %p1169_p1, %p1168_p0 }
 0x363   : > { %p1166_p13 = pneg %p1165_p12 }
 0x364   : > { %p1172_p5 = por %p1171_p3, %p1170_p2 }
 0x366   : > { %p1173_p6 = pnand %p1172_p5, %p1166_p13 }
 0x368   : > { %1176 = shalt.err (!%p1173_p6)
}
 0x369   : > { %1047 = dma.vmem_to_hbm [thread:$0]  (%p1329_p4), %s1516_s15, 64, %s1514_s23, %s789_s28  }
 0x36a PF: > { %p1057_p7 = scmp.ge.s32.totalorder %s1231_s14, 2  ;;  %s827_s20 = sand.u32 1, %s1211_s30  }
 0x36b   : > { %s828_s12 = scalar_lea.sflag [#allocation4], %s827_s20 }
 0x36c   : > { %p1051_p9 = pnand %p1057_p7, %p1336_p8 }
 0x36e   : > { %1202 = dma.done.wait (!%p1051_p9), %s828_s12, 64  }
 0x36f   : > { %1204 = vsyncadd (!%p1051_p9), %s828_s12, 4294967232  ;;  %s837_s18 = scalar_lea.sflag [#allocation6], %s827_s20 }
 0x370   : > { %1206 = dma.done.wait (!%p1051_p9), %s837_s18, 64  }
 0x371   : > { %1208 = vsyncadd (!%p1051_p9), %s837_s18, 4294967232  ;;  %s26_s14 = sadd.s32 1, %s1231_s14   ;;  %s1581_s19 = sld [smem:[#allocation9_spill]] }
 0x372   : > { %p23_p10 = scmp.ge.s32.totalorder %s26_s14, 4   ;;  %s1582_s30 = smov %s1215_s10 }
 0x373   : > { %s1583_s10 = smov %s1219_s11  ;;  %s1584_s11 = smov %s1342_s22 }
 0x374   : > { %s1585_s12 = smov %s1227_s13  ;;  %25 = sbr.rel (!%p23_p10) target bundleno = 6 (0x6), region = 115 }
 0x377   : > { %s1586_s13 = smov %s1581_s19 }
 0x37b   :  { %842 = vsyncpa [#allocation4], 1 }
 0x37c   :  { %844 = vsyncpa [#allocation4 + $0x1], 1 }
 0x37d   :  { %845 = vsyncpa [#allocation6], 1 }
 0x37e   :  { %847 = vsyncpa [#allocation6 + $0x1], 1 }

</bundles_post_ra>
